<compile_context>
chip_gen: v5e
topology: v5e:2x2
jax: 0.10.0
libtpu: 0.0.40
codegen_flags: <defaults>
</compile_context>

<pallas_src>
import jax
import jax.numpy as jnp
from jax.experimental import pallas as pl
from jax.experimental.pallas import tpu as pltpu


# Sublane-tile-aligned row offsets of each parameter column in the packed slab.
_W1, _B1, _W2 = 0, 16, 32          # fc1.weight, fc1.bias, fc2.weight (10 real rows)
_W3, _B3, _W4 = 48, 72, 96         # fc3.weight, fc3.bias, fc4.weight (20 real rows)
_SLAB_ROWS = 120


def mlp_kernel(x_ref, w_ref, b_ref, o_ref):
    x = x_ref[...]                                               # [1, NP] lane-major batch

    # fc1 (1 -> 10) + relu: K=1 outer product on the VPU. Padded rows are zero.
    h = jnp.maximum(w_ref[_W1:_W1 + 16, :] * x + w_ref[_B1:_B1 + 16, :], 0.0)

    # fc2 (10 -> 1) + relu: sublane reduction (padded weight rows are zero,
    # so no mask is needed) + scalar bias from SMEM.
    h = jnp.maximum(
        jnp.sum(w_ref[_W2:_W2 + 16, :] * h, axis=0, keepdims=True) + b_ref[0],
        0.0)

    # fc3 (1 -> 20) + relu: K=1 outer product on the VPU.
    h = jnp.maximum(w_ref[_W3:_W3 + 24, :] * h + w_ref[_B3:_B3 + 24, :], 0.0)

    # fc4 (20 -> 1), no activation: sublane reduction + scalar bias from SMEM.
    o_ref[...] = (
        jnp.sum(w_ref[_W4:_W4 + 24, :] * h, axis=0, keepdims=True) + b_ref[1])


def _column(vec, rows):
    """Flatten a param to a [rows, 1] zero-padded column (padding rows = 0)."""
    vec = jnp.asarray(vec, jnp.float32).reshape(-1)
    return jnp.zeros((rows, 1), jnp.float32).at[:vec.shape[0], 0].set(vec)


def pack_params(p):
    """Pack all Linear params into (w_slab [120,1] f32, b_scalars [2] f32)."""
    w_slab = jnp.concatenate([
        _column(p["fc1_w"], 16),   # rows   0..15 : fc1.weight (10,1)
        _column(p["fc1_b"], 16),   # rows  16..31 : fc1.bias   (10,)
        _column(p["fc2_w"], 16),   # rows  32..47 : fc2.weight (1,10)
        _column(p["fc3_w"], 24),   # rows  48..71 : fc3.weight (20,1)
        _column(p["fc3_b"], 24),   # rows  72..95 : fc3.bias   (20,)
        _column(p["fc4_w"], 24),   # rows  96..119: fc4.weight (1,20)
    ], axis=0)
    assert w_slab.shape == (_SLAB_ROWS, 1)
    b_scalars = jnp.stack(
        [p["fc2_b"].reshape(()), p["fc4_b"].reshape(())]).astype(jnp.float32)
    return w_slab, b_scalars


@jax.jit
def simple_nn_forward(x, w_slab, b_scalars):
    """x: [N, 1] f32  ->  [N, 1] f32."""
    N = x.shape[0]
    NP = ((N + 127) // 128) * 128                    # pad batch to full lanes
    x_lane = jnp.zeros((1, NP), jnp.float32).at[0, :N].set(x[:, 0])

    out = pl.pallas_call(
        mlp_kernel,
        out_shape=jax.ShapeDtypeStruct((1, NP), jnp.float32),
        in_specs=[
            pl.BlockSpec(memory_space=pltpu.MemorySpace.VMEM),   # x (lane-major)
            pl.BlockSpec(memory_space=pltpu.MemorySpace.VMEM),   # packed weight slab
            pl.BlockSpec(memory_space=pltpu.MemorySpace.SMEM),   # scalar biases
        ],
        out_specs=pl.BlockSpec(memory_space=pltpu.MemorySpace.VMEM),
    )(x_lane, w_slab, b_scalars)

    # Layout plumbing (fused under jit): drop lane padding, back to [N, 1].
    return out[0, :N].reshape(N, 1)


def init_params(key):
    """PyTorch nn.Linear default init U(-1/sqrt(fan_in), +1/sqrt(fan_in)),
    stored in PyTorch layout: weight [out, in], bias [out]."""
    layers = [("fc1", 1, 10), ("fc2", 10, 1), ("fc3", 1, 20), ("fc4", 20, 1)]
    params = {}
    for name, fan_in, fan_out in layers:
        key, kw, kb = jax.random.split(key, 3)
        bound = 1.0 / (fan_in ** 0.5)
        params[name + "_w"] = jax.random.uniform(
            kw, (fan_out, fan_in), jnp.float32, -bound, bound)
        params[name + "_b"] = jax.random.uniform(
            kb, (fan_out,), jnp.float32, -bound, bound)
    return params


def reference_forward(x, p):
    """Plain-JAX reference in the conventional [N, features] layout."""
    h = jnp.maximum(x @ p["fc1_w"].T + p["fc1_b"], 0.0)   # [N,1] -> [N,10]
    h = jnp.maximum(h @ p["fc2_w"].T + p["fc2_b"], 0.0)   # [N,10] -> [N,1]
    h = jnp.maximum(h @ p["fc3_w"].T + p["fc3_b"], 0.0)   # [N,1] -> [N,20]
    return h @ p["fc4_w"].T + p["fc4_b"]                  # [N,20] -> [N,1]


if __name__ == "__main__":
    key = jax.random.PRNGKey(0)
    params = init_params(key)
    w_slab, b_scalars = pack_params(params)

    # Same input as the PyTorch script: linspace(-5, 5, 100).view(-1, 1)
    x = jnp.linspace(-5.0, 5.0, 100, dtype=jnp.float32).reshape(-1, 1)

    out = simple_nn_forward(x, w_slab, b_scalars)
    out = jax.block_until_ready(out)

    ref = reference_forward(x, params)
    assert out.shape == (100, 1), out.shape
    assert jnp.allclose(out, ref, atol=1e-5, rtol=1e-5), "mismatch vs reference"

    print("KERNEL_OK")
</pallas_src>

<mosaic_0001>
module attributes {stable_mosaic.version = 11 : i64} {
  func.func @mlp_kernel(%arg0: memref<1x128xf32, #tpu.memory_space<vmem>>, %arg1: memref<120x1xf32, #tpu.memory_space<vmem>>, %arg2: memref<2xf32, #tpu.memory_space<smem>>, %arg3: memref<1x128xf32, #tpu.memory_space<vmem>>) attributes {dimension_semantics = [], scalar_prefetch = 0 : i64, scratch_operands = 0 : i64, tpu.core_type = #tpu.core_type<tc>} {
    %c0 = arith.constant 0 : index
    %c0_0 = arith.constant 0 : index
    %0 = vector.load %arg0[%c0, %c0_0] : memref<1x128xf32, #tpu.memory_space<vmem>>, vector<1x128xf32>
    %c0_1 = arith.constant 0 : index
    %c0_2 = arith.constant 0 : index
    %1 = vector.load %arg1[%c0_1, %c0_2] : memref<120x1xf32, #tpu.memory_space<vmem>>, vector<16x1xf32>
    %2 = vector.broadcast %1 : vector<16x1xf32> to vector<16x128xf32>
    %3 = vector.broadcast %0 : vector<1x128xf32> to vector<16x128xf32>
    %4 = arith.mulf %2, %3 : vector<16x128xf32>
    %c16 = arith.constant 16 : index
    %c0_3 = arith.constant 0 : index
    %5 = vector.load %arg1[%c16, %c0_3] : memref<120x1xf32, #tpu.memory_space<vmem>>, vector<16x1xf32>
    %6 = vector.broadcast %5 : vector<16x1xf32> to vector<16x128xf32>
    %7 = arith.addf %4, %6 : vector<16x128xf32>
    %cst = arith.constant 0.000000e+00 : f32
    %8 = vector.broadcast %cst : f32 to vector<16x128xf32>
    %9 = arith.maximumf %7, %8 : vector<16x128xf32>
    %c32 = arith.constant 32 : index
    %c0_4 = arith.constant 0 : index
    %10 = vector.load %arg1[%c32, %c0_4] : memref<120x1xf32, #tpu.memory_space<vmem>>, vector<16x1xf32>
    %11 = vector.broadcast %10 : vector<16x1xf32> to vector<16x128xf32>
    %12 = arith.mulf %11, %9 : vector<16x128xf32>
    %cst_5 = arith.constant dense<0.000000e+00> : vector<128xf32>
    %13 = vector.multi_reduction <add>, %12, %cst_5 [0] : vector<16x128xf32> to vector<128xf32>
    %14 = vector.shape_cast %13 : vector<128xf32> to vector<1x128xf32>
    %c0_6 = arith.constant 0 : index
    %15 = memref.load %arg2[%c0_6] : memref<2xf32, #tpu.memory_space<smem>>
    %16 = vector.broadcast %15 : f32 to vector<1x128xf32>
    %17 = arith.addf %14, %16 : vector<1x128xf32>
    %cst_7 = arith.constant 0.000000e+00 : f32
    %18 = vector.broadcast %cst_7 : f32 to vector<1x128xf32>
    %19 = arith.maximumf %17, %18 : vector<1x128xf32>
    %c48 = arith.constant 48 : index
    %c0_8 = arith.constant 0 : index
    %20 = vector.load %arg1[%c48, %c0_8] : memref<120x1xf32, #tpu.memory_space<vmem>>, vector<24x1xf32>
    %21 = vector.broadcast %20 : vector<24x1xf32> to vector<24x128xf32>
    %22 = vector.broadcast %19 : vector<1x128xf32> to vector<24x128xf32>
    %23 = arith.mulf %21, %22 : vector<24x128xf32>
    %c72 = arith.constant 72 : index
    %c0_9 = arith.constant 0 : index
    %24 = vector.load %arg1[%c72, %c0_9] : memref<120x1xf32, #tpu.memory_space<vmem>>, vector<24x1xf32>
    %25 = vector.broadcast %24 : vector<24x1xf32> to vector<24x128xf32>
    %26 = arith.addf %23, %25 : vector<24x128xf32>
    %cst_10 = arith.constant 0.000000e+00 : f32
    %27 = vector.broadcast %cst_10 : f32 to vector<24x128xf32>
    %28 = arith.maximumf %26, %27 : vector<24x128xf32>
    %c96 = arith.constant 96 : index
    %c0_11 = arith.constant 0 : index
    %29 = vector.load %arg1[%c96, %c0_11] : memref<120x1xf32, #tpu.memory_space<vmem>>, vector<24x1xf32>
    %30 = vector.broadcast %29 : vector<24x1xf32> to vector<24x128xf32>
    %31 = arith.mulf %30, %28 : vector<24x128xf32>
    %cst_12 = arith.constant dense<0.000000e+00> : vector<128xf32>
    %32 = vector.multi_reduction <add>, %31, %cst_12 [0] : vector<24x128xf32> to vector<128xf32>
    %33 = vector.shape_cast %32 : vector<128xf32> to vector<1x128xf32>
    %c1 = arith.constant 1 : index
    %34 = memref.load %arg2[%c1] : memref<2xf32, #tpu.memory_space<smem>>
    %35 = vector.broadcast %34 : f32 to vector<1x128xf32>
    %36 = arith.addf %33, %35 : vector<1x128xf32>
    %c0_13 = arith.constant 0 : index
    %c0_14 = arith.constant 0 : index
    %37 = vector.load %arg3[%c0_13, %c0_14] : memref<1x128xf32, #tpu.memory_space<vmem>>, vector<1x128xf32>
    tpu.vector_store %arg3[%c0_13, %c0_14], %36 {strides = array<i32>} : memref<1x128xf32, #tpu.memory_space<vmem>>, vector<1x128xf32>,
    return
  }
}

</mosaic_0001>

<bundles_post_ra>
// kernel: simple_nn_forward.1
= control target key start
LH: loop header
LB: loop body
LE: loop exit
PB: predicated region body
PF: predicated region fallthrough
CT: control target
= control target key end

     0   :  { %8 = vsyncpa [#allocation3], 0  ;;  %s190_s15 = smov [#allocation2]   ;;  %s266_s0 = inlined_call_operand.vmem [shape: f32[1,128], index: 0, kind: input, shape index: {}]   ;;  %s267_s1 = inlined_call_operand.vmem [shape: f32[120,1], index: 1, kind: input, shape index: {}]   ;;  %s268_s2 = inlined_call_operand.vmem [shape: f32[2], index: 2, kind: input, shape index: {}]   ;;  %s269_s3 = inlined_call_operand.vmem [shape: f32[1,128], index: 3, kind: output, shape index: {}]  }
   0x1   :  { %s18_s14 = sshll.u32 %s268_s2, 4  ;;  %s19_s14 = int_to_ptr.vmem [resolvable:$true] %s18_s14 }
   0x2   :  { %21 = dma.vmem_to_smem %s19_s14, 16, %s190_s15, [#allocation3]  }
   0x3   :  { %188 = dma.done.wait [#allocation3], 16  }
   0x4   :  { %189 = vsyncadd [#allocation3], 4294967280 }
   0x5   :  { %26 = sfence }
   0x6   :  { %v61_v0 = vld [vmem:[%s267_s1 + $0x20] sm:$0xff]  ;;  %v45_v1 = vld [vmem:[%s267_s1 + $0x10] sm:$0xff]  ;;  %v191_v3 = vmov 0   ;;  %v62_v4 = vld [vmem:[%s267_s1 + $0x28] sm:$0xff] }
   0x7   :  { %v28_v2 = vld [vmem:[%s267_s1] sm:$0xff]  ;;  %174 = vset.pattern.permute.xlu2 %v191_v3  ;;  %173 = vset.pattern.permute.xlu1 %v191_v3  ;;  %v46_v5 = vld [vmem:[%s267_s1 + $0x18] sm:$0xff]  ;;  %v29_v6 = vld [vmem:[%s267_s1 + $0x8] sm:$0xff] }
   0x8   :  { %172 = vset.pattern.permute.xlu0 %v191_v3  ;;  %65 = vperm.xlu2 %174, %v61_v0   ;;  %v88_v7 = vld [vmem:[%s267_s1 + $0x40] sm:$0xff]  ;;  %v87_v8 = vld [vmem:[%s267_s1 + $0x38] sm:$0xff]  ;;  %v86_v9 = vld [vmem:[%s267_s1 + $0x30] sm:$0xff] }
   0x9   :  { %49 = vperm.xlu1 %173, %v45_v1   ;;  %32 = vperm.xlu0 %172, %v28_v2   ;;  %v109_v10 = vld [vmem:[%s267_s1 + $0x58] sm:$0xff]  ;;  %v108_v11 = vld [vmem:[%s267_s1 + $0x50] sm:$0xff]  ;;  %v107_v12 = vld [vmem:[%s267_s1 + $0x48] sm:$0xff] }
   0xa   :  { %v133_v13 = vld [vmem:[%s267_s1 + $0x70] sm:$0xff]  ;;  %v132_v14 = vld [vmem:[%s267_s1 + $0x68] sm:$0xff]  ;;  %v131_v15 = vld [vmem:[%s267_s1 + $0x60] sm:$0xff]  ;;  %s82_s1 = sld [smem:[#allocation2]] }
   0xb   :  { %v175_v16 = vld [vmem:[%s266_s0] ss:$0 sm:$0xff]  ;;  %s169_s0 = sld [smem:[#allocation2 + $0x1]] }
  0x10   :  { %70 = vperm.xlu2 %174, %v62_v4   ;;  %v83_v40 = vstv %s82_s1 }
  0x11   :  { %54 = vperm.xlu1 %173, %v46_v5   ;;  %37 = vperm.xlu0 %172, %v29_v6   ;;  %v161_v5 = vstv %s169_s0 }
  0x18   :  { %101 = vperm.xlu2 %174, %v88_v7  }
  0x19   :  { %96 = vperm.xlu1 %173, %v87_v8   ;;  %91 = vperm.xlu0 %172, %v86_v9  }
  0x20   :  { %122 = vperm.xlu2 %174, %v109_v10  }
  0x21   :  { %117 = vperm.xlu1 %173, %v108_v11   ;;  %112 = vperm.xlu0 %172, %v107_v12  }
  0x28   :  { %146 = vperm.xlu2 %174, %v133_v13  }
  0x29   :  { %141 = vperm.xlu1 %173, %v132_v14   ;;  %136 = vperm.xlu0 %172, %v131_v15  }
  0x62   :  { %v66_v19 = vpop.permute.xlu2 %65 }
  0x6a   :  { %v71_v27 = vpop.permute.xlu2 %70 }
  0x72   :  { %v102_v36 = vpop.permute.xlu2 %101 }
  0x7a   :  { %v123_v45 = vpop.permute.xlu2 %122 }
  0x7b   :  { %v50_v17 = vpop.permute.xlu1 %49  ;;  %v33_v18 = vpop.permute.xlu0 %32 }
  0x7c   :  { %v43_v20 = vmul.f32 %v175_v16, %v33_v18 }
  0x7e   :  { %v57_v21 = vadd.f32 %v50_v17, %v43_v20 }
  0x80   :  { %v59_v25 = vmax.f32 %v57_v21, 0.0 }
  0x82   :  { %v73_v29 = vmul.f32 %v66_v19, %v59_v25  ;;  %v147_v60 = vpop.permute.xlu2 %146 }
  0x83   :  { %v38_v22 = vpop.permute.xlu0 %37  ;;  %v55_v24 = vpop.permute.xlu1 %54 }
  0x84   :  { %v44_v23 = vmul.f32 %v175_v16, %v38_v22 }
  0x86   :  { %v58_v26 = vadd.f32 %v55_v24, %v44_v23 }
  0x88   :  { %v60_v28 = vmax.f32 %v58_v26, 0.0 }
  0x8a   :  { %v74_v30 = vmul.f32 %v71_v27, %v60_v28 }
  0x8b   :  { %v97_v33 = vpop.permute.xlu1 %96  ;;  %v92_v34 = vpop.permute.xlu0 %91 }
  0x8c   :  { %v75_v31 = vadd.f32 %v74_v30, %v73_v29 }
  0x8e   :  { %v76_v32 = vrot.slane %v75_v31, 4 }
  0x90   :  { %v77_v35 = vadd.f32 %v76_v32, %v75_v31 }
  0x92   :  { %v78_v37 = vrot.slane %v77_v35, 2 }
  0x93   :  { %v118_v42 = vpop.permute.xlu1 %117  ;;  %v113_v43 = vpop.permute.xlu0 %112 }
  0x94   :  { %v79_v38 = vadd.f32 %v78_v37, %v77_v35 }
  0x96   :  { %v80_v39 = vrot.slane %v79_v38, 1 }
  0x98   :  { %v81_v41 = vadd.f32 %v80_v39, %v79_v38 }
  0x9a   :  { %v84_v44 = vadd.f32 %v83_v40, %v81_v41 }
  0x9b   :  { %v142_v56 = vpop.permute.xlu1 %141  ;;  %v137_v57 = vpop.permute.xlu0 %136 }
  0x9c   :  { %v85_v46 = vmax.f32 %v84_v44, 0.0 }
  0x9e   :  { %v105_v47 = vmul.f32 %v97_v33, %v85_v46  ;;  %v106_v48 = vmul.f32 %v102_v36, %v85_v46  ;;  %v104_v49 = vmul.f32 %v92_v34, %v85_v46 }
  0xa0   :  { %v126_v50 = vadd.f32 %v118_v42, %v105_v47  ;;  %v125_v51 = vadd.f32 %v113_v43, %v104_v49  ;;  %v127_v52 = vadd.f32 %v123_v45, %v106_v48 }
  0xa2   :  { %v129_v53 = vmax.f32 %v126_v50, 0.0  ;;  %v128_v54 = vmax.f32 %v125_v51, 0.0  ;;  %v130_v55 = vmax.f32 %v127_v52, 0.0 }
  0xa4   :  { %v150_v58 = vmul.f32 %v142_v56, %v129_v53  ;;  %v149_v59 = vmul.f32 %v137_v57, %v128_v54  ;;  %v151_v61 = vmul.f32 %v147_v60, %v130_v55 }
  0xa6   :  { %v152_v62 = vadd.f32 %v150_v58, %v149_v59 }
  0xa8   :  { %v153_v63 = vadd.f32 %v152_v62, %v151_v61 }
  0xaa   :  { %v154_v0 = vrot.slane %v153_v63, 4 }
  0xac   :  { %v155_v1 = vadd.f32 %v154_v0, %v153_v63 }
  0xae   :  { %v156_v2 = vrot.slane %v155_v1, 2 }
  0xb0   :  { %v157_v3 = vadd.f32 %v156_v2, %v155_v1 }
  0xb2   :  { %v158_v4 = vrot.slane %v157_v3, 1 }
  0xb4   :  { %v159_v6 = vadd.f32 %v158_v4, %v157_v3 }
  0xb6   :  { %v162_v7 = vadd.f32 %v161_v5, %v159_v6 }
  0xb8   :  { %163 = vst [vmem:[%s269_s3] sm:$0x1] %v162_v7 }
  0xb9   :  { %168 = vsyncpa [#allocation3], 1 }

</bundles_post_ra>
